<compile_context>
chip_gen: v7x
topology: tpu7x:2x2x1
jax: 0.10.0
libtpu: 0.0.40
codegen_flags: <defaults>
</compile_context>

<pallas_src>
import functools

import jax
import jax.numpy as jnp
from jax.experimental import pallas as pl
from jax.experimental.pallas import tpu as pltpu

EPS = 1e-6


def _round_up(a: int, b: int) -> int:
    return ((a + b - 1) // b) * b


def _sublayer_connection_kernel(x_ref, p_ref, w_ref, o_ref, *, h_valid: int, h_pad: int):
    # x_ref: (TR, Hp) rows of tokens; columns [h_valid:] are zero padding.
    # p_ref: (8, Hp) packed resident params: row0=gamma, row1=beta, row2=bias.
    # w_ref: (Hp, Hp) bf16 sublayer weight (padded rows/cols are zero).
    xf = x_ref[...].astype(jnp.float32)

    gamma = p_ref[0:1, :]
    beta = p_ref[1:2, :]
    bias = p_ref[2:3, :]

    # ---- LayerNorm statistics over the *valid* H columns only ----
    # Padded x columns are zero, so the row sum is unaffected.
    mean = jnp.sum(xf, axis=-1, keepdims=True) * (1.0 / h_valid)
    centered = xf - mean
    sq = jnp.sum(centered * centered, axis=-1, keepdims=True)
    if h_pad != h_valid:
        # Padded columns contribute exactly (h_pad - h_valid) * mean^2; subtract
        # analytically instead of building an iota mask on the VPU.
        sq = jnp.maximum(sq - float(h_pad - h_valid) * (mean * mean), 0.0)

    # torch.std semantics: unbiased (N-1) variance, eps added to std.
    var_unbiased = sq * (1.0 / (h_valid - 1))
    std = jnp.sqrt(var_unbiased)
    inv = pl.reciprocal(std + EPS, approx=True)  # EUP slot; frees VALU issue slots.

    # gamma/beta are zero in padded columns -> normed is exactly 0 there.
    normed = gamma * (centered * inv) + beta

    # ---- sublayer: Linear(size, size) on the MXU (bf16 in, f32 accumulate) ----
    y = jnp.dot(normed.astype(jnp.bfloat16), w_ref[...],
                preferred_element_type=jnp.float32) + bias

    # ---- dropout (eval mode -> identity) + residual ----
    o_ref[...] = (xf + y).astype(o_ref.dtype)


def prepare_sublayer_params(gamma, beta, w, b, *, lane_align: int = 128):
    """One-time preparation of the resident operands (hoisted out of the hot path).

    Returns:
      params: (8, Hp) f32, rows 0/1/2 = gamma / beta / sublayer bias, rest zero.
      w_bf16: (Hp, Hp) bf16 sublayer weight, zero-padded to the lane-aligned Hp.
    """
    H = int(w.shape[0])
    Hp = _round_up(H, lane_align)   # NOTE: use lane_align=256 for large H on v6e/v7x MXU.
    gamma = jnp.asarray(gamma, jnp.float32).reshape(1, H)
    beta = jnp.asarray(beta, jnp.float32).reshape(1, H)
    b = jnp.asarray(b, jnp.float32).reshape(1, H)
    w = jnp.asarray(w)
    pad = Hp - H
    if pad:
        gamma = jnp.pad(gamma, ((0, 0), (0, pad)))   # zeros -> padded normed == 0
        beta = jnp.pad(beta, ((0, 0), (0, pad)))
        b = jnp.pad(b, ((0, 0), (0, pad)))
        w = jnp.pad(w, ((0, pad), (0, pad)))
    params = jnp.concatenate([gamma, beta, b, jnp.zeros((5, Hp), jnp.float32)], axis=0)
    w_bf16 = w.astype(jnp.bfloat16)   # halves weight DMA + VMEM; MXU runs at bf16 rate.
    return params, w_bf16


def sublayer_connection(x, params, w_bf16, *, row_tile: int = 512,
                        vmem_budget_bytes: int = 48 << 20):
    """x: (B, S, H) -> (B, S, H), same dtype as x (pass bf16 x to halve HBM traffic).

    `params` / `w_bf16` come from prepare_sublayer_params (prepared once, reused).
    """
    B, S, H = x.shape
    assert H >= 2, "LayerNorm with torch.std needs size >= 2"
    Hp = int(w_bf16.shape[0])
    R = B * S

    x2d = x.reshape(R, H)
    if Hp != H:
        x2d = jnp.pad(x2d, ((0, 0), (0, Hp - H)))   # lane pad only; rows stay ragged.

    x_bytes = x.dtype.itemsize

    # ---- row-tile selection ----
    if R >= 8:
        # >= 2 grid steps when possible so the 'parallel' axis feeds both v7x TCs.
        TR = max(8, min(_round_up(row_tile, 8), _round_up(pl.cdiv(R, 2), 8)))
        TR = min(TR, (R // 8) * 8)          # never exceed the array's row extent
    else:
        TR = R                              # block == full row extent (allowed)

    def vmem_need(tr):
        io = 2 * tr * Hp * x_bytes + 2 * tr * Hp * x_bytes   # double-buffered x / out blocks
        resident = Hp * Hp * 2 + 8 * Hp * 4                  # weight + packed params (Buffered(1))
        temps = 6 * tr * Hp * 4                              # f32 body temporaries
        return io + resident + temps

    while TR > 8 and vmem_need(TR) > vmem_budget_bytes:
        TR = max(8, _round_up(TR // 2, 8))
    # TODO(synk): if the bf16 weight alone exceeds the budget (Hp >~ 5k), add an
    #             N-column grid axis so the weight streams as (Hp, TN) tiles.

    grid = (pl.cdiv(R, TR),)
    vmem_limit = int(min(max(vmem_need(TR) + (2 << 20), 16 << 20), 56 << 20))

    kernel = functools.partial(_sublayer_connection_kernel, h_valid=H, h_pad=Hp)

    out = pl.pallas_call(
        kernel,
        out_shape=jax.ShapeDtypeStruct((R, Hp), x.dtype),
        grid_spec=pltpu.PrefetchScalarGridSpec(
            num_scalar_prefetch=0,
            grid=grid,
            in_specs=[
                # x rows: pipelined / double-buffered.
                pl.BlockSpec((TR, Hp), lambda i: (i, 0)),
                # packed gamma/beta/bias: resident, single-buffered.
                pl.BlockSpec((8, Hp), lambda i: (0, 0), pipeline_mode=pl.Buffered(1)),
                # sublayer weight: resident, single-buffered.
                pl.BlockSpec((Hp, Hp), lambda i: (0, 0), pipeline_mode=pl.Buffered(1)),
            ],
            out_specs=pl.BlockSpec((TR, Hp), lambda i: (i, 0)),
        ),
        compiler_params=pltpu.CompilerParams(
            # Independent row tiles -> shard across TensorCores on v7x.
            dimension_semantics=("parallel",),
            vmem_limit_bytes=vmem_limit,
        ),
    )(x2d, params, w_bf16)

    return out[:, :H].reshape(B, S, H)


if __name__ == "__main__":
    B, S, H = 2, 8, 32  # batch, seq, hidden (== `size`)

    key = jax.random.PRNGKey(0)
    kx, kw, kb = jax.random.split(key, 3)

    # LayerNorm params (as in __init__: a_2 = ones, b_2 = zeros)
    gamma = jnp.ones((H,), dtype=jnp.float32)
    beta = jnp.zeros((H,), dtype=jnp.float32)

    # Deterministic synthetic sublayer: Linear(H, H)
    w = jax.random.normal(kw, (H, H), dtype=jnp.float32) * (1.0 / jnp.sqrt(H))
    b = jax.random.normal(kb, (H,), dtype=jnp.float32) * 0.01

    # Prepared once (padded / packed / bf16-cast), reused for every call.
    params, w_bf16 = prepare_sublayer_params(gamma, beta, w, b)

    def reference(xf):
        mean = jnp.mean(xf, axis=-1, keepdims=True)
        c = xf - mean
        std = jnp.sqrt(jnp.sum(c * c, axis=-1, keepdims=True) / (H - 1))
        normed = gamma * c / (std + EPS) + beta
        return xf + (normed @ w + b)

    # f32 activation stream (module-default dtype).
    x32 = jax.random.normal(kx, (B, S, H), dtype=jnp.float32)
    out32 = jax.block_until_ready(sublayer_connection(x32, params, w_bf16))
    assert out32.dtype == x32.dtype
    assert jnp.allclose(out32, reference(x32), atol=5e-2, rtol=5e-2), "f32 mismatch vs reference"

    # bf16 activation stream (halved HBM read+write; recommended on v6e/v7x).
    x16 = x32.astype(jnp.bfloat16)
    out16 = jax.block_until_ready(sublayer_connection(x16, params, w_bf16))
    assert out16.dtype == jnp.bfloat16
    assert jnp.allclose(out16.astype(jnp.float32),
                        reference(x16.astype(jnp.float32)),
                        atol=1e-1, rtol=1e-1), "bf16 mismatch vs reference"

    print("KERNEL_OK")
</pallas_src>

<mosaic_0001>
module attributes {stable_mosaic.version = 11 : i64} {
  func.func @_sublayer_connection_kernel(%arg0: i32, %arg1: memref<8x128xf32, #tpu.memory_space<vmem>>, %arg2: memref<8x128xf32, #tpu.memory_space<vmem>>, %arg3: memref<128x128xbf16, #tpu.memory_space<vmem>>, %arg4: memref<8x128xf32, #tpu.memory_space<vmem>>) attributes {dimension_semantics = [#tpu.dimension_semantics<parallel>], iteration_bounds = array<i64: 2>, scalar_prefetch = 0 : i64, scratch_operands = 0 : i64, tpu.core_type = #tpu.core_type<tc>, window_params = [{transform_indices = @transform_0, window_bounds = array<i64: 8, 128>}, {pipeline_mode = #tpu.pipeline_mode<synchronous>, transform_indices = @transform_1, window_bounds = array<i64: 8, 128>}, {pipeline_mode = #tpu.pipeline_mode<synchronous>, transform_indices = @transform_2, window_bounds = array<i64: 128, 128>}, {transform_indices = @transform_3, window_bounds = array<i64: 8, 128>}]} {
    %c0 = arith.constant 0 : index
    %c0_0 = arith.constant 0 : index
    %0 = vector.load %arg1[%c0, %c0_0] : memref<8x128xf32, #tpu.memory_space<vmem>>, vector<8x128xf32>
    %c0_1 = arith.constant 0 : index
    %c0_2 = arith.constant 0 : index
    %1 = vector.load %arg2[%c0_1, %c0_2] : memref<8x128xf32, #tpu.memory_space<vmem>>, vector<1x128xf32>
    %c1 = arith.constant 1 : index
    %c0_3 = arith.constant 0 : index
    %2 = vector.load %arg2[%c1, %c0_3] : memref<8x128xf32, #tpu.memory_space<vmem>>, vector<1x128xf32>
    %c2 = arith.constant 2 : index
    %c0_4 = arith.constant 0 : index
    %3 = vector.load %arg2[%c2, %c0_4] : memref<8x128xf32, #tpu.memory_space<vmem>>, vector<1x128xf32>
    %cst = arith.constant dense<0.000000e+00> : vector<8xf32>
    %4 = vector.multi_reduction <add>, %0, %cst [1] : vector<8x128xf32> to vector<8xf32>
    %5 = vector.shape_cast %4 : vector<8xf32> to vector<8x1xf32>
    %cst_5 = arith.constant 3.125000e-02 : f32
    %6 = vector.broadcast %cst_5 : f32 to vector<8x1xf32>
    %7 = arith.mulf %5, %6 : vector<8x1xf32>
    %8 = vector.broadcast %7 : vector<8x1xf32> to vector<8x128xf32>
    %9 = arith.subf %0, %8 : vector<8x128xf32>
    %10 = arith.mulf %9, %9 : vector<8x128xf32>
    %cst_6 = arith.constant dense<0.000000e+00> : vector<8xf32>
    %11 = vector.multi_reduction <add>, %10, %cst_6 [1] : vector<8x128xf32> to vector<8xf32>
    %12 = vector.shape_cast %11 : vector<8xf32> to vector<8x1xf32>
    %13 = arith.mulf %7, %7 : vector<8x1xf32>
    %cst_7 = arith.constant 9.600000e+01 : f32
    %14 = vector.broadcast %cst_7 : f32 to vector<8x1xf32>
    %15 = arith.mulf %14, %13 : vector<8x1xf32>
    %16 = arith.subf %12, %15 : vector<8x1xf32>
    %cst_8 = arith.constant 0.000000e+00 : f32
    %17 = vector.broadcast %cst_8 : f32 to vector<8x1xf32>
    %18 = arith.maximumf %16, %17 : vector<8x1xf32>
    %cst_9 = arith.constant 0.0322580636 : f32
    %19 = vector.broadcast %cst_9 : f32 to vector<8x1xf32>
    %20 = arith.mulf %18, %19 : vector<8x1xf32>
    %21 = math.sqrt %20 : vector<8x1xf32>
    %cst_10 = arith.constant 9.99999997E-7 : f32
    %22 = vector.broadcast %cst_10 : f32 to vector<8x1xf32>
    %23 = arith.addf %21, %22 : vector<8x1xf32>
    %24 = tpu.reciprocal %23 {approx = true} : vector<8x1xf32> -> vector<8x1xf32>
    %25 = vector.broadcast %24 : vector<8x1xf32> to vector<8x128xf32>
    %26 = arith.mulf %9, %25 : vector<8x128xf32>
    %27 = vector.broadcast %1 : vector<1x128xf32> to vector<8x128xf32>
    %28 = arith.mulf %27, %26 : vector<8x128xf32>
    %29 = vector.broadcast %2 : vector<1x128xf32> to vector<8x128xf32>
    %30 = arith.addf %28, %29 : vector<8x128xf32>
    %31 = arith.truncf %30 : vector<8x128xf32> to vector<8x128xbf16>
    %c0_11 = arith.constant 0 : index
    %c0_12 = arith.constant 0 : index
    %32 = vector.load %arg3[%c0_11, %c0_12] : memref<128x128xbf16, #tpu.memory_space<vmem>>, vector<128x128xbf16>
    %cst_13 = arith.constant dense<0.000000e+00> : vector<8x128xf32>
    %33 = tpu.matmul %31, %32, %cst_13 {dimension_numbers = #tpu.dot_dimension_numbers<[1], [0], [0], [1], [0, 0, 1, 1], [], []>} : vector<8x128xbf16>, vector<128x128xbf16>, vector<8x128xf32> -> vector<8x128xf32>
    %34 = vector.broadcast %3 : vector<1x128xf32> to vector<8x128xf32>
    %35 = arith.addf %33, %34 : vector<8x128xf32>
    %36 = arith.addf %0, %35 : vector<8x128xf32>
    %c0_14 = arith.constant 0 : index
    %c0_15 = arith.constant 0 : index
    %37 = vector.load %arg4[%c0_14, %c0_15] : memref<8x128xf32, #tpu.memory_space<vmem>>, vector<8x128xf32>
    tpu.vector_store %arg4[%c0_14, %c0_15], %36 {strides = array<i32>} : memref<8x128xf32, #tpu.memory_space<vmem>>, vector<8x128xf32>,
    return
  }
  func.func @transform_0(%arg0: i32) -> (i32, i32) {
    %c0_i32 = arith.constant 0 : i32
    %c0_i32_0 = arith.constant 0 : i32
    return %arg0, %c0_i32 : i32, i32
  }
  func.func @transform_1(%arg0: i32) -> (i32, i32) {
    %c0_i32 = arith.constant 0 : i32
    %c0_i32_0 = arith.constant 0 : i32
    %c0_i32_1 = arith.constant 0 : i32
    return %c0_i32, %c0_i32_0 : i32, i32
  }
  func.func @transform_2(%arg0: i32) -> (i32, i32) {
    %c0_i32 = arith.constant 0 : i32
    %c0_i32_0 = arith.constant 0 : i32
    %c0_i32_1 = arith.constant 0 : i32
    return %c0_i32, %c0_i32_0 : i32, i32
  }
  func.func @transform_3(%arg0: i32) -> (i32, i32) {
    %c0_i32 = arith.constant 0 : i32
    %c0_i32_0 = arith.constant 0 : i32
    return %arg0, %c0_i32 : i32, i32
  }
}

</mosaic_0001>

<bundles_post_ra>
// kernel: tpu_custom_call.1
= control target key start
LH: loop header
LB: loop body
LE: loop exit
PB: predicated region body
PF: predicated region fallthrough
CT: control target
= control target key end

     0   :  { %8 = vsyncpa [#allocation3], 0  ;;  %s1020_s0 = inlined_call_operand.hbm [shape: f32[16,128], index: 0, kind: input, shape index: {}]   ;;  %s1021_s1 = inlined_call_operand.hbm [shape: f32[8,128], index: 1, kind: input, shape index: {}]   ;;  %s1022_s2 = inlined_call_operand.hbm [shape: bf16[128,128], index: 2, kind: input, shape index: {}]   ;;  %s1023_s3 = inlined_call_operand.hbm [shape: f32[16,128], index: 3, kind: output, shape index: {}]  }
   0x1   :  { %10 = vsyncpa [#allocation3 + $0x1], 0 }
   0x2   :  { %11 = vsyncpa [#allocation6], 0 }
   0x3   :  { %12 = vsyncpa [#allocation4], 0 }
   0x4   :  { %14 = vsyncpa [#allocation4 + $0x1], 0  ;;  %s789_s12 = smov 0   ;;  %s791_s13 = smov 0  }
   0x5   :  { %s793_s14 = smov 0   ;;  %s795_s15 = smov 0  }
   0x6 LB: > { %s810_s16 = sadd.s32 4294967295, %s759_s15   ;;  %s464_s17 = sadd.s32 4294967294, %s759_s15   ;;  %s759_s15 = sphi %s795_s15, %s1043_s15   ;;  %s755_s14 = sphi %s793_s14, %s1042_s14   ;;  %s751_s13 = sphi %s791_s13, %s1041_s13   ;;  %s747_s12 = sphi %s789_s12, %s1040_s12  }
   0x7   : > { %p40_p0 = scmp.ne.s32.totalorder %s751_s13, %s747_s12  ;;  %p1024_p1 = scmp.eq.s32.totalorder %s810_s16, 0 }
   0x8   : > { %p112_p3 = scmp.eq.s32.totalorder %s464_s17, 1  ;;  %p465_p5 = scmp.ge.s32.totalorder %s759_s15, 1 }
   0x9   : > { %p819_p4 = por %p1024_p1, %p40_p0  ;;  %p119_p7 = scmp.lt.s32.totalorder %s759_s15, 3 }
   0xa   : > { %p824_p6 = por %p112_p3, %p40_p0  ;;  %s761_s21 = smov [#allocation5]  }
   0xb   : > { %s1027_s18 = scalar_select %p819_p4, 1, 0 }
   0xc   : > { %s1028_s19 = scalar_select %p824_p6, 1, 0 }
   0xd   : > { %p829_p8 = pnand %p465_p5, %p119_p7  ;;  %s132_s22 = sshll.u32 %s761_s21, 4  ;;  %s133_s22 = int_to_ptr.vmem [resolvable:$true] %s132_s22 }
   0xe   : > { %s762_s23 = smov [#allocation7]   ;;  %s603_s28 = scalar_lea.hbm %s1021_s1, 128 }
   0xf   : > { %s1029_s20 = scalar_select %p829_p8, 1, 0 }
  0x10   : > { %p532_p10 = pneg %p829_p8  ;;  %s142_s24 = sshll.u32 %s762_s23, 4  ;;  %s842_s24 = int_to_ptr.vmem [resolvable:$true] %s142_s24 }
  0x11   : > { %p604_p12 = scmp.ne.s32.totalorder %s1021_s1, %s603_s28  ;;  %p610_p5 = scmp.lt.u32.totalorder %s603_s28, %s1021_s1 }
  0x12   : > { %p838_p11 = pnand %p532_p10, %p1024_p1 }
  0x14   : > { %p605_p13 = pneg %p838_p11 }
  0x16   : > { %p606_p0 = pnand %p605_p13, %p604_p12 }
  0x18   : > { %p607_p3 = pneg %p606_p0 }
  0x1a   : > { %p612_p7 = pnand %p610_p5, %p607_p3 }
  0x1c   : > { %615 = shalt.err (!%p612_p7)
}
  0x1d   : > { %s616_s6 = scalar_lea.vmem %s133_s22, 128  ;;  %p624_p2 = scmp.lt.s32.totalorder %s133_s22, %s133_s22 }
  0x1e   : > { %p617_p10 = scmp.ne.s32.totalorder %s133_s22, %s616_s6  ;;  %p625_p6 = scmp.lt.s32.totalorder %s616_s6, %s616_s6 }
  0x20   : > { %p619_p9 = pnand %p617_p10, %p605_p13  ;;  %p626_p4 = por %p625_p6, %p624_p2 }
  0x22   : > { %p620_p1 = pneg %p619_p9 }
  0x24   : > { %p627_p8 = pnand %p626_p4, %p620_p1 }
  0x26   : > { %630 = shalt.err (!%p627_p8)
}
  0x27   : > { %535 = dma.hbm_to_vmem [thread:$0]  (!%p838_p11), %s1021_s1, 128, %s133_s22, [#allocation6]  }
  0x28   : > { %s631_s11 = scalar_lea.hbm %s1022_s2, 1024 }
  0x29   : > { %p632_p9 = scmp.ne.s32.totalorder %s1022_s2, %s631_s11  ;;  %p638_p4 = scmp.lt.u32.totalorder %s631_s11, %s1022_s2 }
  0x2b   : > { %p634_p2 = pnand %p632_p9, %p605_p13 }
  0x2d   : > { %p635_p1 = pneg %p634_p2 }
  0x2f   : > { %p640_p6 = pnand %p638_p4, %p635_p1 }
  0x31   : > { %643 = shalt.err (!%p640_p6)
}
  0x32   : > { %s644_s22 = scalar_lea.vmem %s842_s24, 1024  ;;  %p652_p3 = scmp.lt.s32.totalorder %s842_s24, %s842_s24 }
  0x33   : > { %p645_p8 = scmp.ne.s32.totalorder %s842_s24, %s644_s22  ;;  %p653_p5 = scmp.lt.s32.totalorder %s644_s22, %s644_s22 }
  0x35   : > { %p647_p12 = pnand %p645_p8, %p605_p13  ;;  %p654_p7 = por %p653_p5, %p652_p3 }
  0x37   : > { %p648_p0 = pneg %p647_p12 }
  0x39   : > { %p655_p10 = pnand %p654_p7, %p648_p0 }
  0x3b   : > { %658 = shalt.err (!%p655_p10)
}
  0x3c   : > { %s763_s27 = smov 64   ;;  %s764_s28 = smov 4  }
  0x3d   : > { %538 = dma.hbm_to_vmem [thread:$0]  (!%p838_p11), %s1022_s2, 1024, %s842_s24, [#allocation6], %s763_s27, %s763_s27, %s764_s28  }
  0x3e   : > { %s892_s4 = sadd.s32 1, %s759_s15   ;;  %s27_s5 = sadd.s32 1, %s755_s14 }
  0x3f   : > { %s24_s6 = ssub.s32 %s759_s15, %s892_s4  ;;  %p34_p13 = scmp.ne.s32.totalorder %s755_s14, %s751_s13 }
  0x40   : > { %p25_p9 = scmp.eq.s32.totalorder %s24_s6, 0  ;;  %p35_p2 = scmp.eq.s32.totalorder %s759_s15, 0 }
  0x41   : > { %p1031_p1 = scmp.eq.s32.totalorder %s810_s16, 1  ;;  %p549_p6 = scmp.lt.s32.totalorder %s759_s15, 2 }
  0x42   : > { %s908_s8 = scalar_select %p25_p9, %s755_s14, %s27_s5  }
  0x43   : > { %p902_p4 = por %p1031_p1, %p34_p13  ;;  %p36_p8 = por %p35_p2, %p34_p13 }
  0x44   : > { %s156_s25 = sand.u32 1, %s755_s14   ;;  %s470_s24 = sshll.u32 %s759_s15, 7 }
  0x45   : > { %s469_s9 = sshll.u32 %s156_s25, 3  ;;  %s915_s17 = scalar_lea.hbm %s1020_s0, %s470_s24 }
  0x46   : > { %s160_s21 = scalar_lea.vmem [#allocation2], %s469_s9  ;;  %p919_p11 = pnand %p549_p6, %p36_p8 }
  0x47   : > { %s167_s23 = sshll.u32 %s160_s21, 4  ;;  %s157_s22 = scalar_lea.sflag [#allocation3], %s156_s25  ;;  %s917_s23 = int_to_ptr.vmem [resolvable:$true] %s167_s23 }
  0x48   : > { %s659_s27 = scalar_lea.hbm %s915_s17, 128  ;;  %p661_p0 = pneg %p919_p11 }
  0x49   : > { %p660_p12 = scmp.ne.s32.totalorder %s915_s17, %s659_s27  ;;  %s664_s30 = scalar_lea.hbm %s1020_s0, 256 }
  0x4a   : > { %p665_p7 = scmp.lt.u32.totalorder %s915_s17, %s1020_s0  ;;  %p666_p10 = scmp.lt.u32.totalorder %s664_s30, %s659_s27 }
  0x4b   : > { %p662_p3 = pnand %p661_p0, %p660_p12  ;;  %p668_p9 = scmp.lt.u32.totalorder %s659_s27, %s915_s17 }
  0x4c   : > { %p667_p13 = por %p666_p10, %p665_p7 }
  0x4d   : > { %p663_p5 = pneg %p662_p3 }
  0x4e   : > { %p669_p2 = por %p668_p9, %p667_p13 }
  0x50   : > { %p670_p1 = pnand %p669_p2, %p663_p5 }
  0x52   : > { %673 = shalt.err (!%p670_p1)
}
  0x53   : > { %s674_s25 = scalar_lea.vmem %s917_s23, 128  ;;  %s765_s9 = smov [#allocation2]  }
  0x54   : > { %p675_p6 = scmp.ne.s32.totalorder %s917_s23, %s674_s25  ;;  %s679_s24 = sshll.u32 %s765_s9, 4  ;;  %s680_s24 = int_to_ptr.vmem [resolvable:$false] %s679_s24 }
  0x55   : > { %s681_s10 = scalar_lea.vmem %s680_s24, 256  ;;  %p682_p3 = scmp.lt.s32.totalorder %s917_s23, %s680_s24 }
  0x56   : > { %p677_p8 = pnand %p675_p6, %p661_p0  ;;  %p683_p7 = scmp.lt.s32.totalorder %s681_s10, %s674_s25 }
  0x58   : > { %p678_p12 = pneg %p677_p8  ;;  %p684_p10 = por %p683_p7, %p682_p3 }
  0x5a   : > { %p685_p13 = pnand %p684_p10, %p678_p12 }
  0x5c   : > { %688 = shalt.err (!%p685_p13)
}
  0x5d   : > { %542 = dma.hbm_to_vmem [thread:$0]  (!%p919_p11), %s915_s17, 128, %s917_s23, %s157_s22  }
  0x5e   : > { %p1034_p5 = scmp.ne.s32.totalorder %s1029_s20, 0 }
  0x5f   : > { %s951_s11 = sand.u32 (!%p1034_p5), 1, %s751_s13   ;;  %p1035_p0 = scmp.ne.s32.totalorder (!%p1034_p5), %s1027_s18, 0 }
  0x60   : > { %176 = sbr.rel (%p1034_p5) target bundleno = 670 (0x29e), region = 32  ;;  %s472_s21 = sshll.u32 (!%p1034_p5), %s951_s11, 3 }
  0x61   : > { %s179_s27 = scalar_lea.sflag (!%p1034_p5), [#allocation3], %s951_s11  ;;  %s182_s28 = scalar_lea.vmem (!%p1034_p5), [#allocation2], %s472_s21 }
  0x67   : > { %734 = dma.done.wait (%p1035_p0), %s179_s27, 128  }
  0x68   : > { %736 = vsyncadd (%p1035_p0), %s179_s27, 4294967168  ;;  %p1036_p11 = scmp.eq.s32.totalorder %s810_s16, 0 }
  0x6a   : > { %738 = dma.done.wait (%p1036_p11), [#allocation6], 1152   ;;  %p1037_p9 = pmov %p1036_p11 }
  0x6b   : > { %v965_v0 = vld [vmem:[%s182_s28] sm:$0xff]  ;;  %v591_v5 = vld [vmem:[#allocation7] sm:$0xff]   ;;  %v766_v6 = vmov 0.0   ;;  %v594_v9 = vld [vmem:[#allocation7 + $0x18] sm:$0xff]   ;;  %vm767_vm0 = vmmov 0   ;;  %s488_s18 = sshll.u32 %s810_s16, 7 }
  0x6c   : > { %740 = vsyncadd (%p1037_p9), [#allocation6], 4294966144  ;;  %218 = vadd.xlane.f32.xlu0 %v965_v0  ;;  %500 = vmatprep.subr.bf16.mxu0 %v766_v6  ;;  %v592_v7 = vld [vmem:[#allocation7 + $0x8] sm:$0xff]   ;;  %v593_v8 = vld [vmem:[#allocation7 + $0x10] sm:$0xff]   ;;  %s212_s20 = scalar_lea.vmem [#allocation8], %s472_s21  ;;  %s976_s22 = scalar_lea.hbm %s1023_s3, %s488_s18 }
  0x6d   : > { %501 = vmatpush3.bf16.msra.mxu0 %v591_v5  ;;  %516 = vmatprep.mubr.msk.bf16.mxu0 %vm767_vm0, %v766_v6  ;;  %v595_v10 = vld [vmem:[#allocation7 + $0x20] sm:$0xff]   ;;  %v596_v11 = vld [vmem:[#allocation7 + $0x28] sm:$0xff]   ;;  %v597_v12 = vld [vmem:[#allocation7 + $0x30] sm:$0xff]   ;;  %s375_s17 = sshll.u32 %s212_s20, 4  ;;  %s362_s16 = scalar_lea.sflag [#allocation4], %s951_s11  ;;  %s978_s17 = int_to_ptr.vmem [resolvable:$true] %s375_s17 }
  0x6e   : > { %502 = vmatprep.subr.bf16.mxu0 %v766_v6  ;;  %v598_v13 = vld [vmem:[#allocation7 + $0x38] sm:$0xff]   ;;  %s689_s29 = scalar_lea.vmem %s978_s17, 128  ;;  %s768_s30 = smov [#allocation8]  }
  0x6f   : > { %v476_v27 = vld [vmem:[#allocation5] ss:$0 sm:$0xff]  ;;  %v477_v29 = vld [vmem:[#allocation5 + $0x1] ss:$0 sm:$0xff]  ;;  %v478_v33 = vld [vmem:[#allocation5 + $0x2] ss:$0 sm:$0xff]  ;;  %p690_p2 = scmp.ne.s32.totalorder %s978_s17, %s689_s29 }
  0x70   : > { %s693_s5 = sshll.u32 %s768_s30, 4  ;;  %s694_s5 = int_to_ptr.vmem [resolvable:$false] %s693_s5 }
  0x71   : > { %503 = vmatpush3.bf16.msra.mxu0 %v592_v7  ;;  %p691_p1 = pnand %p690_p2, %p902_p4  ;;  %s695_s6 = scalar_lea.vmem %s694_s5, 256 }
  0x72   : > { %504 = vmatprep.subr.bf16.mxu0 %v766_v6  ;;  %p696_p8 = scmp.lt.s32.totalorder %s978_s17, %s694_s5  ;;  %p697_p12 = scmp.lt.s32.totalorder %s695_s6, %s689_s29 }
  0x73   : > { %p692_p6 = pneg %p691_p1 }
  0x74   : > { %p698_p3 = por %p697_p12, %p696_p8 }
  0x75   : > { %505 = vmatpush3.bf16.msra.mxu0 %v593_v8 }
  0x76   : > { %506 = vmatprep.subr.bf16.mxu0 %v766_v6  ;;  %p699_p7 = pnand %p698_p3, %p692_p6 }
  0x79   : > { %507 = vmatpush3.bf16.msra.mxu0 %v594_v9 }
  0x7a   : > { %508 = vmatprep.subr.bf16.mxu0 %v766_v6 }
  0x7d   : > { %509 = vmatpush3.bf16.msra.mxu0 %v595_v10 }
  0x7e   : > { %510 = vmatprep.subr.bf16.mxu0 %v766_v6 }
  0x81   : > { %511 = vmatpush3.bf16.msra.mxu0 %v596_v11 }
  0x82   : > { %512 = vmatprep.subr.bf16.mxu0 %v766_v6 }
  0x85   : > { %513 = vmatpush3.bf16.msra.mxu0 %v597_v12 }
  0x86   : > { %514 = vmatprep.subr.bf16.mxu0 %v766_v6 }
  0x89   : > { %515 = vmatpush3.bf16.msra.mxu0 %v598_v13 }
  0xf9   : > { %v219_v1 = vpop.xlane.xlu0 %218 }
  0xfa   : > { %v220_v2 = vmul.f32 0.03125, %v219_v1 }
  0xfc   : > { %v221_v3 = vsub.f32 %v965_v0, %v220_v2  ;;  %v225_v14 = vmul.f32 %v220_v2, %v220_v2 }
  0xfe   : > { %v222_v4 = vmul.f32 %v221_v3, %v221_v3  ;;  %v226_v15 = vmul.f32 96.0, %v225_v14 }
 0x100   : > { %223 = vadd.xlane.f32.xlu0 %v222_v4 }
 0x18d   : > { %v224_v16 = vpop.xlane.xlu0 %223 }
 0x18e   : > { %v227_v17 = vsub.f32 %v224_v16, %v226_v15 }
 0x190   : > { %v228_v18 = vmax.f32 %v227_v17, 0.0 }
 0x192   : > { %v229_v19 = vmul.f32 0.032258064, %v228_v18 }
 0x194   : > { %599 = vrsqrt.f32 %v229_v19  ;;  %vm232_vm1 = vcmp.eq.f32.partialorder %v229_v19, inf  ;;  %v235_v22 = vand.u32 2147483648, %v229_v19  ;;  %vm234_vm2 = vcmp.eq.f32.partialorder %v229_v19, 0.0 }
 0x19e   : > { %v600_v20 = vpop.eup %599 }
 0x19f   : > { %v231_v21 = vmul.f32 %v600_v20, %v229_v19 }
 0x1a1   : > { %v233_v23 = vsel %vm232_vm1, %v229_v19, %v231_v21 }
 0x1a2   : > { %v236_v24 = vsel %vm234_vm2, %v235_v22, %v233_v23 }
 0x1a3   : > { %v237_v25 = vadd.f32 1e-06, %v236_v24 }
 0x1a5   : > { %601 = vrcp.f32 %v237_v25 }
 0x1af   : > { %v602_v26 = vpop.eup %601 }
 0x1b0   : > { %v239_v28 = vmul.f32 %v602_v26, %v221_v3 }
 0x1b2   : > { %v244_v30 = vmul.f32 %v476_v27, %v239_v28 }
 0x1b4   : > { %v249_v31 = vadd.f32 %v477_v29, %v244_v30 }
 0x1b6   : > { %v250_v32 = vpack.c.bf16 %v249_v31, %v249_v31 }
 0x1b8   : > { %517 = vmatmul.mubr.bf16.vlgmr.msra.gmra.mrb[0].mxu0 %v250_v32 }
 0x28b   : > { %v353_v34 = vpop.f32.mrb[0].mxu0 }
 0x28c   : > { %v354_v35 = vadd.f32 %v478_v33, %v353_v34  ;;  %v518_v36 = vpop.f32.mrb[1].mxu0 }
 0x28d   : > { %v356_v37 = vpop.f32.mrb[2].mxu0 }
 0x28e   : > { %v359_v38 = vadd.f32 %v354_v35, %v965_v0  ;;  %v519_v39 = vpop.f32.mrb[3].mxu0 }
 0x290   : > { %360 = vst [vmem:[%s212_s20] sm:$0xff] %v359_v38 }
 0x291   : > { %702 = shalt.err (!%p699_p7)
}
 0x292   : > { %s703_s25 = scalar_lea.hbm %s976_s22, 128  ;;  %s707_s10 = scalar_lea.hbm %s1023_s3, 256 }
 0x293   : > { %p704_p10 = scmp.ne.s32.totalorder %s976_s22, %s703_s25  ;;  %p708_p0 = scmp.lt.u32.totalorder %s976_s22, %s1023_s3 }
 0x294   : > { %p709_p11 = scmp.lt.u32.totalorder %s707_s10, %s703_s25  ;;  %p711_p2 = scmp.lt.u32.totalorder %s703_s25, %s976_s22 }
 0x295   : > { %p705_p13 = pnand %p704_p10, %p902_p4 }
 0x296   : > { %p710_p9 = por %p709_p11, %p708_p0 }
 0x297   : > { %p706_p5 = pneg %p705_p13 }
 0x298   : > { %p712_p1 = por %p711_p2, %p710_p9 }
 0x29a   : > { %p713_p6 = pnand %p712_p1, %p706_p5 }
 0x29c   : > { %716 = shalt.err (!%p713_p6)
}
 0x29d   : > { %530 = dma.vmem_to_hbm [thread:$0]  (%p902_p4), %s978_s17, 128, %s976_s22, %s362_s16  }
 0x29e PF: > { %s387_s27 = sand.u32 1, %s747_s12   ;;  %p1038_p8 = scmp.ne.s32.totalorder %s1028_s19, 0 }
 0x29f   : > { %p1039_p12 = scmp.ge.s32.totalorder %s759_s15, 2  ;;  %s388_s28 = scalar_lea.sflag [#allocation4], %s387_s27 }
 0x2a1   : > { %p544_p3 = pnand %p1039_p12, %p1038_p8 }
 0x2a3   : > { %742 = dma.done.wait (!%p544_p3), %s388_s28, 128  }
 0x2a4   : > { %744 = vsyncadd (!%p544_p3), %s388_s28, 4294967168  ;;  %p17_p7 = scmp.ge.s32.totalorder %s892_s4, 4   ;;  %s1040_s12 = smov %s751_s13 }
 0x2a5   : > { %s1041_s13 = smov %s755_s14  ;;  %s1042_s14 = smov %s908_s8 }
 0x2a6   : > { %s1043_s15 = smov %s892_s4  ;;  %19 = sbr.rel (!%p17_p7) target bundleno = 6 (0x6), region = 85 }
 0x2ad   :  { %393 = vsyncpa [#allocation3], 1 }
 0x2ae   :  { %395 = vsyncpa [#allocation3 + $0x1], 1 }
 0x2af   :  { %396 = vsyncpa [#allocation6], 1 }
 0x2b0   :  { %397 = vsyncpa [#allocation4], 1 }
 0x2b1   :  { %399 = vsyncpa [#allocation4 + $0x1], 1 }

</bundles_post_ra>
